<compile_context>
chip_gen: v5e
topology: v5e:2x2
jax: 0.10.0
libtpu: 0.0.40
codegen_flags: <defaults>
</compile_context>

<pallas_src>
import numpy as np
import jax
import jax.numpy as jnp
from jax.experimental import pallas as pl
from jax.experimental.pallas import tpu as pltpu  # noqa: F401  (TPU backend)

block_size = 4        # max sequence length (tril buffer size in the module)
dropout = 0.0         # dropout p=0.0 -> identity
n_embd = 32
n_head = 4
head_size = n_embd // n_head   # 8


def mla_kernel(x_ref, w_ref, bias_ref, o_ref):
    """Whole batch in one invocation; all heads as one einsum batch dim.

    x_ref:    (B*T, C)        bf16
    w_ref:    (H, C, 3*D)     bf16   (columns ordered [k | q | v] per head)
    bias_ref: (B*T, B*T)      f32    constant: 0 where attention allowed, -1e30 else
    o_ref:    (B*T, H*D)      f32
    """
    H, C, threeD = w_ref.shape
    D = threeD // 3
    N = x_ref.shape[0]
    scale = C ** (-0.5)   # scaled by n_embd (x.shape[-1]), exactly as the PyTorch code

    # ---- fused QKV projection, batched over heads (bf16 in, f32 accumulate) ----
    xb = jnp.broadcast_to(x_ref[...][None], (H, N, C))              # leading-dim bcast
    kqv = jnp.einsum('hnc,hck->hnk', xb, w_ref[...],
                     preferred_element_type=jnp.float32)            # (H, N, 3D) f32
    kqv = kqv.astype(jnp.bfloat16)   # only ever used as MXU operands below

    k = kqv[:, :, 0 * D:1 * D]       # (H, N, D)  static, 8-aligned lane slices
    q = kqv[:, :, 1 * D:2 * D]
    v = kqv[:, :, 2 * D:3 * D]

    # ---- scores for all heads at once; feature axis contracted directly ------
    s = jnp.einsum('hnd,hmd->hnm', q, k,
                   preferred_element_type=jnp.float32) * scale      # (H, N, N) f32
    # Constant additive bias: causal within a batch element, -1e30 across them
    # (after softmax those entries underflow to exactly 0, so batches never mix).
    s = s + bias_ref[...]

    # ---- stable softmax (f32 on the VPU), reciprocal on the EUP --------------
    s = s - jnp.max(s, axis=-1, keepdims=True)
    p = jnp.exp(s)
    denom = jnp.sum(p, axis=-1, keepdims=True)
    p = p * pl.reciprocal(denom, approx=True)   # EUP slot, frees the VALU
    # dropout(p=0.0) is identity

    o = jnp.einsum('hnm,hmd->hnd', p.astype(jnp.bfloat16), v,
                   preferred_element_type=jnp.float32)              # (H, N, D) f32

    # ---- reassemble heads along the lane axis and store once -----------------
    out = jnp.concatenate([o[h] for h in range(H)], axis=-1)        # (N, H*D)
    o_ref[...] = out.astype(o_ref.dtype)


def multi_level_attention(x, wk, wq, wv):
    """x: (B, T, C); wk/wq/wv: (n_head, C, head_size) per-head Linear weights
    (already transposed so y = x @ w[h]).  Returns (B, T, n_head*head_size)."""
    B, T, C = x.shape
    H, _, D = wk.shape
    N = B * T
    out_dtype = x.dtype

    # Host-side (free) weight packing: one fused (H, C, 3*D) operand, bf16 MXU input.
    w = jnp.concatenate([wk, wq, wv], axis=-1).astype(jnp.bfloat16)   # (H, C, 3D)
    # Flatten (B, T) in the wrapper so the kernel never repacks sublanes.
    x2 = x.reshape(N, C).astype(jnp.bfloat16)

    # Trace-time constant mask bias over the flattened (B*T) sequence axis:
    # allowed iff same batch element AND causal.
    bi = np.arange(N) // T
    ti = np.arange(N) % T
    allowed = (bi[:, None] == bi[None, :]) & (ti[None, :] <= ti[:, None])
    mask_bias = jnp.asarray(np.where(allowed, 0.0, -1e30), dtype=jnp.float32)

    # No grid: the whole problem (~2 KB) fits trivially in VMEM; one invocation
    # avoids per-grid-step overhead and per-step weight DMAs / double buffers.
    # TODO(synk): when B/T/C grow, add a leading ("parallel",) batch grid axis
    # (megacore on v7x), (8,128)-aligned tiles sized for 64 MiB VMEM on v7x /
    # 16 MiB scoped default on v5e, and set vmem_limit_bytes explicitly.
    out = pl.pallas_call(
        mla_kernel,
        out_shape=jax.ShapeDtypeStruct((N, H * D), out_dtype),
    )(x2, w, mask_bias)
    return out.reshape(B, T, H * D)


def reference(x, wk, wq, wv):
    """Pure-JAX (f32) reference mirroring the PyTorch forward pass."""
    B, T, C = x.shape
    tril = jnp.tril(jnp.ones((block_size, block_size)))[:T, :T]
    outs = []
    for h in range(n_head):
        k = x @ wk[h]
        q = x @ wq[h]
        v = x @ wv[h]
        wei = (q @ jnp.swapaxes(k, -2, -1)) * C ** (-0.5)
        wei = jnp.where(tril == 0, -jnp.inf, wei)
        wei = jax.nn.softmax(wei, axis=-1)
        outs.append(wei @ v)
    return jnp.concatenate(outs, axis=-1)


if __name__ == "__main__":
    key = jax.random.PRNGKey(0)
    kx, kk, kq, kv = jax.random.split(key, 4)

    B, T, C = 2, block_size, n_embd            # (2, 4, 32)
    x = jax.random.normal(kx, (B, T, C), dtype=jnp.float32)

    # Per-head nn.Linear weights (head_size, n_embd), stored transposed as
    # (n_head, n_embd, head_size) so that head h computes x @ w[h] (== nn.Linear).
    def make_w(k):
        w = jax.random.normal(k, (n_head, head_size, n_embd), dtype=jnp.float32) * 0.1
        return jnp.swapaxes(w, -2, -1)          # (H, C, D)

    wk = make_w(kk)
    wq = make_w(kq)
    wv = make_w(kv)

    out = multi_level_attention(x, wk, wq, wv)
    out = jax.block_until_ready(out)

    ref = reference(x, wk, wq, wv)
    assert out.shape == (B, T, n_head * head_size)
    # Tolerance covers bf16 MXU operands (rel ~2^-9) plus the EUP approximate
    # reciprocal in the softmax normalization (~1e-3 relative); everything else f32.
    assert jnp.allclose(out, ref, atol=2e-2, rtol=2e-2), "mismatch vs reference"

    print("KERNEL_OK")
</pallas_src>

<mosaic_0001>
module attributes {stable_mosaic.version = 11 : i64} {
  func.func @mla_kernel(%arg0: memref<8x32xbf16, #tpu.memory_space<vmem>>, %arg1: memref<4x32x24xbf16, #tpu.memory_space<vmem>>, %arg2: memref<8x8xf32, #tpu.memory_space<vmem>>, %arg3: memref<8x32xf32, #tpu.memory_space<vmem>>) attributes {dimension_semantics = [], scalar_prefetch = 0 : i64, scratch_operands = 0 : i64, tpu.core_type = #tpu.core_type<tc>} {
    %c0 = arith.constant 0 : index
    %c0_0 = arith.constant 0 : index
    %0 = vector.load %arg0[%c0, %c0_0] : memref<8x32xbf16, #tpu.memory_space<vmem>>, vector<8x32xbf16>
    %1 = vector.shape_cast %0 : vector<8x32xbf16> to vector<1x8x32xbf16>
    %2 = vector.shape_cast %1 : vector<1x8x32xbf16> to vector<1x8x32xbf16>
    %3 = vector.broadcast %2 : vector<1x8x32xbf16> to vector<4x8x32xbf16>
    %c0_1 = arith.constant 0 : index
    %c0_2 = arith.constant 0 : index
    %c0_3 = arith.constant 0 : index
    %4 = vector.load %arg1[%c0_1, %c0_2, %c0_3] : memref<4x32x24xbf16, #tpu.memory_space<vmem>>, vector<4x32x24xbf16>
    "tpu.trace_start"() <{level = 10 : i32, message = "hnc,hck->hnk"}> : () -> ()
    %cst = arith.constant dense<0.000000e+00> : vector<4x8x24xf32>
    %5 = tpu.matmul %3, %4, %cst {dimension_numbers = #tpu.dot_dimension_numbers<[2], [1], [1], [2], [0, 0, 0, 1, 1, 2], [0], [0]>} : vector<4x8x32xbf16>, vector<4x32x24xbf16>, vector<4x8x24xf32> -> vector<4x8x24xf32>
    "tpu.trace_stop"() : () -> ()
    %6 = arith.truncf %5 : vector<4x8x24xf32> to vector<4x8x24xbf16>
    %7 = vector.extract_strided_slice %6 {offsets = [0, 0, 0], sizes = [4, 8, 8], strides = [1, 1, 1]} : vector<4x8x24xbf16> to vector<4x8x8xbf16>
    %8 = vector.extract_strided_slice %6 {offsets = [0, 0, 8], sizes = [4, 8, 8], strides = [1, 1, 1]} : vector<4x8x24xbf16> to vector<4x8x8xbf16>
    %9 = vector.extract_strided_slice %6 {offsets = [0, 0, 16], sizes = [4, 8, 8], strides = [1, 1, 1]} : vector<4x8x24xbf16> to vector<4x8x8xbf16>
    "tpu.trace_start"() <{level = 10 : i32, message = "hnd,hmd->hnm"}> : () -> ()
    %cst_4 = arith.constant dense<0.000000e+00> : vector<4x8x8xf32>
    %10 = tpu.matmul %8, %7, %cst_4 {dimension_numbers = #tpu.dot_dimension_numbers<[2], [2], [1], [1], [0, 0, 0, 1, 1, 1], [0], [0]>} : vector<4x8x8xbf16>, vector<4x8x8xbf16>, vector<4x8x8xf32> -> vector<4x8x8xf32>
    "tpu.trace_stop"() : () -> ()
    %cst_5 = arith.constant 0.176776692 : f32
    %11 = vector.broadcast %cst_5 : f32 to vector<4x8x8xf32>
    %12 = arith.mulf %10, %11 : vector<4x8x8xf32>
    %c0_6 = arith.constant 0 : index
    %c0_7 = arith.constant 0 : index
    %13 = vector.load %arg2[%c0_6, %c0_7] : memref<8x8xf32, #tpu.memory_space<vmem>>, vector<8x8xf32>
    %14 = vector.shape_cast %13 : vector<8x8xf32> to vector<1x8x8xf32>
    %15 = vector.broadcast %14 : vector<1x8x8xf32> to vector<4x8x8xf32>
    %16 = arith.addf %12, %15 : vector<4x8x8xf32>
    %cst_8 = arith.constant dense<0xFF800000> : vector<4x8xf32>
    %17 = vector.multi_reduction <maximumf>, %16, %cst_8 [2] : vector<4x8x8xf32> to vector<4x8xf32>
    %18 = vector.shape_cast %17 : vector<4x8xf32> to vector<4x8x1xf32>
    %19 = vector.broadcast %18 : vector<4x8x1xf32> to vector<4x8x8xf32>
    %20 = arith.subf %16, %19 : vector<4x8x8xf32>
    %21 = math.exp %20 : vector<4x8x8xf32>
    %cst_9 = arith.constant dense<0.000000e+00> : vector<4x8xf32>
    %22 = vector.multi_reduction <add>, %21, %cst_9 [2] : vector<4x8x8xf32> to vector<4x8xf32>
    %23 = vector.shape_cast %22 : vector<4x8xf32> to vector<4x8x1xf32>
    %24 = tpu.reciprocal %23 {approx = true} : vector<4x8x1xf32> -> vector<4x8x1xf32>
    %25 = vector.broadcast %24 : vector<4x8x1xf32> to vector<4x8x8xf32>
    %26 = arith.mulf %21, %25 : vector<4x8x8xf32>
    %27 = arith.truncf %26 : vector<4x8x8xf32> to vector<4x8x8xbf16>
    "tpu.trace_start"() <{level = 10 : i32, message = "hnm,hmd->hnd"}> : () -> ()
    %cst_10 = arith.constant dense<0.000000e+00> : vector<4x8x8xf32>
    %28 = tpu.matmul %27, %9, %cst_10 {dimension_numbers = #tpu.dot_dimension_numbers<[2], [1], [1], [2], [0, 0, 0, 1, 1, 2], [0], [0]>} : vector<4x8x8xbf16>, vector<4x8x8xbf16>, vector<4x8x8xf32> -> vector<4x8x8xf32>
    "tpu.trace_stop"() : () -> ()
    %29 = vector.extract_strided_slice %28 {offsets = [0, 0, 0], sizes = [1, 8, 8], strides = [1, 1, 1]} : vector<4x8x8xf32> to vector<1x8x8xf32>
    %30 = vector.shape_cast %29 : vector<1x8x8xf32> to vector<8x8xf32>
    %31 = vector.extract_strided_slice %28 {offsets = [1, 0, 0], sizes = [1, 8, 8], strides = [1, 1, 1]} : vector<4x8x8xf32> to vector<1x8x8xf32>
    %32 = vector.shape_cast %31 : vector<1x8x8xf32> to vector<8x8xf32>
    %33 = vector.extract_strided_slice %28 {offsets = [2, 0, 0], sizes = [1, 8, 8], strides = [1, 1, 1]} : vector<4x8x8xf32> to vector<1x8x8xf32>
    %34 = vector.shape_cast %33 : vector<1x8x8xf32> to vector<8x8xf32>
    %35 = vector.extract_strided_slice %28 {offsets = [3, 0, 0], sizes = [1, 8, 8], strides = [1, 1, 1]} : vector<4x8x8xf32> to vector<1x8x8xf32>
    %36 = vector.shape_cast %35 : vector<1x8x8xf32> to vector<8x8xf32>
    %37 = tpu.concatenate %30, %32, %34, %36 in 1 : vector<8x8xf32>, vector<8x8xf32>, vector<8x8xf32>, vector<8x8xf32> -> vector<8x32xf32>
    %c0_11 = arith.constant 0 : index
    %c0_12 = arith.constant 0 : index
    %38 = vector.load %arg3[%c0_11, %c0_12] : memref<8x32xf32, #tpu.memory_space<vmem>>, vector<8x32xf32>
    tpu.vector_store %arg3[%c0_11, %c0_12], %37 {strides = array<i32>} : memref<8x32xf32, #tpu.memory_space<vmem>>, vector<8x32xf32>,
    return
  }
}

</mosaic_0001>

<bundles_post_ra>
// kernel: tpu_custom_call.1
= control target key start
LH: loop header
LB: loop body
LE: loop exit
PB: predicated region body
PF: predicated region fallthrough
CT: control target
= control target key end

     0   :  { %s611_s0 = inlined_call_operand.vmem [shape: bf16[8,32], index: 0, kind: input, shape index: {}]   ;;  %s612_s1 = inlined_call_operand.vmem [shape: bf16[4,32,24], index: 1, kind: input, shape index: {}]   ;;  %s613_s2 = inlined_call_operand.vmem [shape: f32[8,8], index: 2, kind: input, shape index: {}]   ;;  %s614_s3 = inlined_call_operand.hbm [shape: f32[8,32], index: 3, kind: output, shape index: {}]  }
   0x1   :  { %v461_v0 = vld [vmem:[%s612_s1 + $0x18] sm:$0xff]  ;;  %v463_v1 = vld [vmem:[%s612_s1 + $0x28] sm:$0xff]  ;;  %v460_v3 = vld [vmem:[%s612_s1 + $0x10] sm:$0xff] }
   0x2   :  { %v465_v2 = vld [vmem:[%s612_s1 + $0x38] sm:$0xff]  ;;  %80 = vmatpush.bf16.msra.mxu1 %v461_v0  ;;  %105 = vmatpush.bf16.msra.mxu2 %v463_v1  ;;  %v462_v4 = vld [vmem:[%s612_s1 + $0x20] sm:$0xff]  ;;  %v459_v5 = vld [vmem:[%s612_s1 + $0x8] sm:$0xff] }
   0x3   :  { %130 = vmatpush.bf16.msra.mxu3 %v465_v2  ;;  %v464_v6 = vld [vmem:[%s612_s1 + $0x30] sm:$0xff] }
   0x4   :  { %8 = vsyncpa [#allocation3], 0  ;;  %55 = vmatpush.bf16.msra.mxu0 %v459_v5  ;;  %v458_v7 = vld [vmem:[%s612_s1] sm:$0xff]  ;;  %vm45_vm0 = vcmask 261120   ;;  %vm146_vm1 = vcmask 64512   ;;  %vm300_vm2 = vcmask 1043456  }
   0x5   :  { %v16_v8 = vld [vmem:[%s611_s0] sm:$0xf]  ;;  %s514_s0 = smov 120   ;;  %s516_s4 = smov 8   ;;  %vm393_vm3 = vcmask 130048   ;;  %vm395_vm4 = vcmask 195584  }
   0x6   :  { %81 = vmatpush.bf16.msra.mxu1 %v460_v3  ;;  %106 = vmatpush.bf16.msra.mxu2 %v462_v4  ;;  %v242_v38 = vld [vmem:[%s613_s2] sm:$0xff]  ;;  %s515_s2 = smov 112   ;;  %s517_s5 = smov 24  }
   0x7   :  { %131 = vmatpush.bf16.msra.mxu3 %v464_v6  ;;  %s518_s6 = smov 16   ;;  %s519_s7 = smov [#allocation2]  }
   0x8   :  { %56 = vmatpush.bf16.msra.mxu0 %v458_v7  ;;  %s403_s8 = sshll.u32 %s519_s7, 4  ;;  %s405_s11 = sshll.u32 %s614_s3, 4  ;;  %s404_s8 = int_to_ptr.vmem [resolvable:$true] %s403_s8  ;;  %s406_s11 = int_to_ptr.hbm [resolvable:$true] %s405_s11 }
   0x9   :  { %431 = vmatmul.msk.bf16.vlgmr.msra.gmra.mxu1 %vm45_vm0, %v16_v8  ;;  %440 = vmatmul.msk.bf16.vlgmr.msra.gmra.mxu2 %vm45_vm0, %v16_v8 }
   0xa   :  { %449 = vmatmul.msk.bf16.vlgmr.msra.gmra.mxu3 %vm45_vm0, %v16_v8 }
   0xb   :  { %422 = vmatmul.msk.bf16.vlgmr.msra.gmra.mxu0 %vm45_vm0, %v16_v8 }
  0x86   :  { %v83_v9 = vpop.f32.mrf.mxu1 }
  0x87   :  { %v138_v10 = vpack.c.bf16 %v83_v9, %v83_v9 }
  0x88   :  { %v58_v11 = vpop.f32.mrf.mxu0 }
  0x89   :  { %v167_v12 = vunpack.c.l.b16 %v138_v10  ;;  %v137_v13 = vpack.c.bf16 %v58_v11, %v58_v11  ;;  %v175_v14 = vsel %vm146_vm1, %v138_v10, 0 }
  0x8a   :  { %184 = vmatpush.bf16.xpose.msrb.mxu1 %v175_v14 }
  0x8b   :  { %v168_v15 = vpack.c.b16 %v167_v12, %v167_v12  ;;  %v142_v19 = vunpack.c.l.b16 %v137_v13  ;;  %v151_v32 = vsel %vm146_vm1, %v137_v13, 0 }
  0x8c   :  { %v108_v16 = vpop.f32.mrf.mxu2  ;;  %160 = vmatpush.bf16.xpose.msrb.mxu0 %v151_v32 }
  0x8d   :  { %v139_v17 = vpack.c.bf16 %v108_v16, %v108_v16  ;;  %v133_v18 = vpop.f32.mrf.mxu3  ;;  %169 = vrot.lane.b32.xlu1 %v168_v15, %s514_s0  ;;  %v143_v26 = vpack.c.b16 %v142_v19, %v142_v19 }
  0x8e   :  { %v140_v20 = vpack.c.bf16 %v133_v18, %v133_v18  ;;  %v85_v21 = vpop.f32.mrf.mxu1 }
  0x8f   :  { %v199_v22 = vsel %vm146_vm1, %v139_v17, 0  ;;  %v191_v23 = vunpack.c.l.b16 %v139_v17 }
  0x90   :  { %208 = vmatpush.bf16.xpose.msrb.mxu2 %v199_v22  ;;  %v223_v24 = vsel %vm146_vm1, %v140_v20, 0  ;;  %v60_v25 = vpop.f32.mrf.mxu0  ;;  %v215_v28 = vunpack.c.l.b16 %v140_v20 }
  0x91   :  { %v574_v27 = vpack.c.b16 %v191_v23, %v191_v23  ;;  %232 = vmatpush.bf16.xpose.msrb.mxu3 %v223_v24 }
  0x92   :  { %v216_v31 = vpack.c.b16 %v215_v28, %v215_v28 }
  0x93   :  { %193 = vrot.lane.b32.xlu0 %v574_v27, %s514_s0 }
  0x94   :  { %v110_v29 = vpop.f32.mrf.mxu2 }
  0x95   :  { %v135_v30 = vpop.f32.mrf.mxu3  ;;  %144 = vrot.lane.b32.xlu1 %v143_v26, %s514_s0 }
  0x9b   :  { %217 = vrot.lane.b32.xlu0 %v216_v31, %s514_s0 }
  0xff   :  { %v170_v33 = vpop.permute.xlu1 %169 }
 0x100   :  { %451 = vmatmul.msk.bf16.vlgmr.msrb.gmra.mxu1 %vm146_vm1, %v170_v33 }
 0x105   :  { %v194_v34 = vpop.permute.xlu0 %193 }
 0x106   :  { %452 = vmatmul.msk.bf16.vlgmr.msrb.gmra.mxu2 %vm146_vm1, %v194_v34 }
 0x107   :  { %v145_v35 = vpop.permute.xlu1 %144 }
 0x108   :  { %450 = vmatmul.msk.bf16.vlgmr.msrb.gmra.mxu0 %vm146_vm1, %v145_v35 }
 0x10d   :  { %v218_v36 = vpop.permute.xlu0 %217 }
 0x10e   :  { %453 = vmatmul.msk.bf16.vlgmr.msrb.gmra.mxu3 %vm146_vm1, %v218_v36 }
 0x17d   :  { %v186_v37 = vpop.f32.mrf.mxu1 }
 0x17e   :  { %v239_v39 = vmul.f32 0.17677669, %v186_v37 }
 0x180   :  { %v244_v40 = vadd.f32 %v242_v38, %v239_v39 }
 0x182   :  { %v250_v41 = vsel %vm146_vm1, %v244_v40, -inf }
 0x183   :  { %251 = vmax.xlane.f32.xlu0 %v250_v41 }
 0x185   :  { %v162_v42 = vpop.f32.mrf.mxu0  ;;  %v188_v43 = vpop.f32.mrf.mxu1 }
 0x186   :  { %v238_v44 = vmul.f32 0.17677669, %v162_v42 }
 0x188   :  { %v243_v45 = vadd.f32 %v242_v38, %v238_v44 }
 0x189   :  { %v210_v46 = vpop.f32.mrf.mxu2 }
 0x18a   :  { %v240_v47 = vmul.f32 0.17677669, %v210_v46  ;;  %v247_v48 = vsel %vm146_vm1, %v243_v45, -inf }
 0x18b   :  { %248 = vmax.xlane.f32.xlu1 %v247_v48 }
 0x18c   :  { %v245_v49 = vadd.f32 %v242_v38, %v240_v47 }
 0x18d   :  { %v164_v50 = vpop.f32.mrf.mxu0 }
 0x18e   :  { %v253_v51 = vsel %vm146_vm1, %v245_v49, -inf }
 0x18f   :  { %254 = vmax.xlane.f32.xlu2 %v253_v51 }
 0x191   :  { %v212_v52 = vpop.f32.mrf.mxu2  ;;  %v234_v53 = vpop.f32.mrf.mxu3 }
 0x192   :  { %v241_v54 = vmul.f32 0.17677669, %v234_v53 }
 0x194   :  { %v246_v55 = vadd.f32 %v242_v38, %v241_v54 }
 0x196   :  { %v256_v56 = vsel %vm146_vm1, %v246_v55, -inf }
 0x197   :  { %257 = vmax.xlane.f32.xlu2 %v256_v56  ;;  %359 = vrot.lane.b32.xlu0 %v216_v31, %s515_s2 }
 0x199   :  { %v236_v57 = vpop.f32.mrf.mxu3 }
 0x19f   :  { %295 = vrot.lane.b32.xlu0 %v143_v26, %s515_s2 }
 0x1a4   :  { %317 = vrot.lane.b32.xlu1 %v168_v15, %s515_s2 }
 0x1f6   :  { %v252_v58 = vpop.xlane.xlu0 %251 }
 0x1f7   :  { %v260_v59 = vsub.f32 %v244_v40, %v252_v58 }
 0x1f9   :  { %v265_v60 = vmul.f32 1.442695, %v260_v59 }
 0x1fb   :  { %472 = vpow2.f32 %v265_v60 }
 0x1fe   :  { %v249_v8 = vpop.xlane.xlu1 %248 }
 0x1ff   :  { %v259_v16 = vsub.f32 %v243_v45, %v249_v8 }
 0x201   :  { %v473_v61 = vpop.eup %472  ;;  %v263_v17 = vmul.f32 1.442695, %v259_v16 }
 0x202   :  { %v255_v62 = vpop.xlane.xlu2 %254  ;;  %v274_v63 = vsel %vm146_vm1, %v473_v61, 0.0 }
 0x203   :  { %v261_v0 = vsub.f32 %v245_v49, %v255_v62  ;;  %275 = vadd.xlane.f32.xlu2 %v274_v63 }
 0x205   :  { %v267_v1 = vmul.f32 1.442695, %v261_v0 }
 0x207   :  { %474 = vpow2.f32 %v267_v1 }
 0x209   :  { %v360_v2 = vpop.permute.xlu0 %359 }
 0x20a   :  { %v365_v3 = vsel %vm300_vm2, %v360_v2, 0  ;;  %v258_v4 = vpop.xlane.xlu2 %257 }
 0x20b   :  { %v262_v5 = vsub.f32 %v246_v55, %v258_v4  ;;  %374 = vmatpush.bf16.msra.mxu3 %v365_v3 }
 0x20d   :  { %v475_v6 = vpop.eup %474  ;;  %v269_v7 = vmul.f32 1.442695, %v262_v5 }
 0x20e   :  { %v277_v9 = vsel %vm146_vm1, %v475_v6, 0.0 }
 0x20f   :  { %476 = vpow2.f32 %v269_v7  ;;  %278 = vadd.xlane.f32.xlu2 %v277_v9 }
 0x210   :  { %478 = vpow2.f32 %v263_v17 }
 0x211   :  { %v296_v10 = vpop.permute.xlu0 %295 }
 0x212   :  { %v302_v11 = vsel %vm300_vm2, %v296_v10, 0 }
 0x213   :  { %311 = vmatpush.bf16.msra.mxu0 %v302_v11 }
 0x215   :  { %v477_v12 = vpop.eup %476 }
 0x216   :  { %v318_v13 = vpop.permute.xlu1 %317  ;;  %v280_v14 = vsel %vm146_vm1, %v477_v12, 0.0  ;;  %v479_v18 = vpop.eup %478 }
 0x217   :  { %v323_v15 = vsel %vm300_vm2, %v318_v13, 0  ;;  %281 = vadd.xlane.f32.xlu2 %v280_v14  ;;  %v271_v19 = vsel %vm146_vm1, %v479_v18, 0.0 }
 0x218   :  { %332 = vmatpush.bf16.msra.mxu1 %v323_v15 }
 0x22f   :  { %338 = vrot.lane.b32.xlu2 %v574_v27, %s515_s2 }
 0x258   :  { %272 = vadd.xlane.f32.xlu2 %v271_v19 }
 0x276   :  { %v276_v20 = vpop.xlane.xlu2 %275 }
 0x277   :  { %480 = vrcp.f32 %v276_v20 }
 0x27d   :  { %v481_v21 = vpop.eup %480 }
 0x27e   :  { %v288_v22 = vmul.f32 %v481_v21, %v473_v61 }
 0x280   :  { %v292_v23 = vpack.c.bf16 %v288_v22, %v288_v22 }
 0x282   :  { %v279_v24 = vpop.xlane.xlu2 %278  ;;  %455 = vmatmul.msk.bf16.vlgmr.msra.gmra.mxu1 %vm146_vm1, %v292_v23 }
 0x283   :  { %482 = vrcp.f32 %v279_v24 }
 0x289   :  { %v483_v26 = vpop.eup %482 }
 0x28a   :  { %v282_v25 = vpop.xlane.xlu2 %281  ;;  %v289_v28 = vmul.f32 %v483_v26, %v475_v6 }
 0x28b   :  { %484 = vrcp.f32 %v282_v25 }
 0x28c   :  { %v293_v33 = vpack.c.bf16 %v289_v28, %v289_v28 }
 0x291   :  { %v485_v27 = vpop.eup %484 }
 0x292   :  { %v290_v29 = vmul.f32 %v485_v27, %v477_v12  ;;  %v339_v30 = vpop.permute.xlu2 %338 }
 0x293   :  { %v344_v31 = vsel %vm300_vm2, %v339_v30, 0 }
 0x294   :  { %v294_v32 = vpack.c.bf16 %v290_v29, %v290_v29  ;;  %353 = vmatpush.bf16.msra.mxu2 %v344_v31 }
 0x296   :  { %457 = vmatmul.msk.bf16.vlgmr.msra.gmra.mxu3 %vm146_vm1, %v294_v32 }
 0x297   :  { %456 = vmatmul.msk.bf16.vlgmr.msra.gmra.mxu2 %vm146_vm1, %v293_v33 }
 0x2cb   :  { %v273_v34 = vpop.xlane.xlu2 %272 }
 0x2cc   :  { %486 = vrcp.f32 %v273_v34 }
 0x2d2   :  { %v487_v35 = vpop.eup %486 }
 0x2d3   :  { %v287_v36 = vmul.f32 %v487_v35, %v479_v18 }
 0x2d5   :  { %v291_v37 = vpack.c.bf16 %v287_v36, %v287_v36 }
 0x2d7   :  { %454 = vmatmul.msk.bf16.vlgmr.msra.gmra.mxu0 %vm146_vm1, %v291_v37 }
 0x2ff   :  { %v334_v38 = vpop.f32.mrf.mxu1 }
 0x300   :  { %381 = vrot.lane.b32.xlu1 %v334_v38, %s516_s4 }
 0x307   :  { %v336_v39 = vpop.f32.mrf.mxu1 }
 0x319   :  { %v376_v40 = vpop.f32.mrf.mxu3 }
 0x31a   :  { %v355_v41 = vpop.f32.mrf.mxu2  ;;  %389 = vrot.lane.b32.xlu1 %v376_v40, %s517_s5 }
 0x31b   :  { %385 = vrot.lane.b32.xlu0 %v355_v41, %s518_s6 }
 0x321   :  { %v378_v42 = vpop.f32.mrf.mxu3 }
 0x322   :  { %v357_v43 = vpop.f32.mrf.mxu2 }
 0x354   :  { %v313_v44 = vpop.f32.mrf.mxu0 }
 0x35c   :  { %v315_v45 = vpop.f32.mrf.mxu0 }
 0x372   :  { %v382_v46 = vpop.permute.xlu1 %381 }
 0x373   :  { %v392_v47 = vsel %vm146_vm1, %v313_v44, %v382_v46 }
 0x38c   :  { %v390_v49 = vpop.permute.xlu1 %389 }
 0x38d   :  { %v386_v48 = vpop.permute.xlu0 %385 }
 0x38e   :  { %v394_v50 = vsel %vm393_vm3, %v392_v47, %v386_v48 }
 0x38f   :  { %v396_v51 = vsel %vm395_vm4, %v394_v50, %v390_v49 }
 0x390   :  { %397 = vst.msk [vmem:[#allocation2] sm:$0xff] %vm45_vm0, %v396_v51 }
 0x391   :  { %408 = dma.vmem_to_hbm [thread:$0]  %s404_s8, 128, %s406_s11, [#allocation3]  }
 0x392   :  { %512 = dma.done.wait [#allocation3], 128  }
 0x393   :  { %513 = vsyncadd [#allocation3], 4294967168 }
 0x394   :  { %413 = vsyncpa [#allocation3], 1 }

</bundles_post_ra>
